<compile_context>
chip_gen: v5e
topology: v5e:2x2
jax: 0.10.0
libtpu: 0.0.40
codegen_flags: <defaults>
</compile_context>

<pallas_src>
import jax
import jax.numpy as jnp
from jax.experimental import pallas as pl
from jax.experimental.pallas import tpu as pltpu


def _make_embed_kernel(TS, S, NBUF, gather_into_out):
    """Build the kernel body with static tile sizes closed over."""
    n_pos_blocks = S // TS  # TS always divides S (chosen by the wrapper)

    def kernel(ids_ref, wpe_ref, wte_hbm, out_ref, *scratch):
        # ids_ref : (B*S,) int32 token ids in SMEM (scalar prefetch)
        # wpe_ref : (S, H) VMEM-resident positional table (fetched once)
        # wte_hbm : (V, H) raw HBM ref (memory_space=pl.ANY)
        # out_ref : (TS, H) output tile
        # scratch : [gbuf?] + [sems]; gbuf only when a dtype cast is needed
        if gather_into_out:
            (sems,) = scratch
            gbuf = out_ref                 # gather straight into the output tile
        else:
            gbuf, sems = scratch           # staging buffer in wte's dtype

        g = pl.program_id(0)
        tok0 = g * TS                      # flat token offset of this block
        pos0 = (g % n_pos_blocks) * TS     # position offset within the sequence
        if TS % 8 == 0:
            pos0 = pl.multiple_of(pos0, 8)

        def start_row(j):
            row = ids_ref[tok0 + j]
            pltpu.make_async_copy(
                wte_hbm.at[pl.ds(row, 1)],
                gbuf.at[pl.ds(j, 1)],
                sems.at[j % NBUF],
            ).start()

        def wait_row(j):
            # src index is irrelevant for wait(); only shape + semaphore matter.
            pltpu.make_async_copy(
                wte_hbm.at[pl.ds(0, 1)],
                gbuf.at[pl.ds(j, 1)],
                sems.at[j % NBUF],
            ).wait()

        # Prime the ring: keep up to NBUF row-gather DMAs in flight.
        @pl.loop(0, min(NBUF, TS))
        def _(j):
            start_row(j)

        @pl.loop(0, TS)
        def _(j):
            wait_row(j)
            if NBUF < TS:
                @pl.when(j + NBUF < TS)
                def _():
                    start_row(j + NBUF)

        wpe_tile = wpe_ref[pl.ds(pos0, TS), :]
        out_ref[...] = (gbuf[...] + wpe_tile).astype(out_ref.dtype)

    return kernel


def _pick_seq_tile(S, cap=256):
    """Largest divisor of S that is <= cap, preferring multiples of 8."""
    cap = min(S, cap)
    best_any = 1
    for d in range(cap, 0, -1):
        if S % d == 0:
            if best_any == 1:
                best_any = d               # largest divisor <= cap
            if d % 8 == 0:
                return d                   # largest mult-of-8 divisor <= cap
    return best_any


def gpt2_embedding_phase(input_ids, wte, wpe, *, token_tile=256, dma_depth=16):
    """inputs_embeds = wte[input_ids] + wpe[arange(S)] (broadcast over batch)."""
    B, S = input_ids.shape
    V, H = wte.shape
    P, H2 = wpe.shape
    assert H == H2, "wte / wpe hidden sizes differ"
    assert S <= P, "sequence longer than positional table"

    out_dtype = jnp.promote_types(wte.dtype, wpe.dtype)
    gather_into_out = (wte.dtype == out_dtype)   # DMA cannot cast; gate on dtype

    TS = _pick_seq_tile(S, token_tile)           # tokens per grid step (divides S)
    n_tok = B * S
    n_blocks = n_tok // TS
    NBUF = max(1, min(dma_depth, TS))            # DMA-in-flight depth

    flat_ids = input_ids.reshape(-1).astype(jnp.int32)   # -> SMEM via prefetch
    wpe_s = wpe[:S]                                       # positions = arange(S)

    kernel = _make_embed_kernel(TS, S, NBUF, gather_into_out)

    scratch_shapes = []
    if not gather_into_out:
        scratch_shapes.append(pltpu.VMEM((TS, H), wte.dtype))   # gathered rows
    scratch_shapes.append(pltpu.SemaphoreType.DMA((NBUF,)))     # DMA sem ring

    # Memory-bound cost hint: one wte row read + one output row write per token,
    # one pass over wpe[:S], plus the token ids.
    bytes_accessed = (
        n_tok * H * (wte.dtype.itemsize + jnp.dtype(out_dtype).itemsize)
        + S * H * wpe.dtype.itemsize
        + n_tok * 4
    )
    cost = pl.CostEstimate(
        flops=n_tok * H,
        transcendentals=0,
        bytes_accessed=int(bytes_accessed),
    )

    out = pl.pallas_call(
        kernel,
        out_shape=jax.ShapeDtypeStruct((n_tok, H), out_dtype),
        grid_spec=pltpu.PrefetchScalarGridSpec(
            num_scalar_prefetch=1,
            grid=(n_blocks,),
            in_specs=[
                # Full wpe[:S] lives in VMEM; constant block index -> one DMA.
                pl.BlockSpec((S, H), lambda g, ids: (0, 0)),
                # wte stays in HBM; rows gathered manually inside the kernel.
                pl.BlockSpec(memory_space=pl.ANY),
            ],
            out_specs=pl.BlockSpec((TS, H), lambda g, ids: (g, 0)),
            scratch_shapes=scratch_shapes,
        ),
        compiler_params=pltpu.CompilerParams(
            dimension_semantics=("parallel",),
        ),
        cost_estimate=cost,
    )(flat_ids, wpe_s, wte)

    return out.reshape(B, S, H)


if __name__ == "__main__":
    # Small, GPT2-like synthetic shapes.
    B, S = 2, 8              # batch, sequence length
    V, P, H = 512, 64, 128   # vocab size, max positions, hidden size

    key = jax.random.PRNGKey(0)
    k_ids, k_wte, k_wpe = jax.random.split(key, 3)

    input_ids = jax.random.randint(k_ids, (B, S), 0, V, dtype=jnp.int32)
    wte = jax.random.normal(k_wte, (V, H), dtype=jnp.float32) * 0.02
    wpe = jax.random.normal(k_wpe, (P, H), dtype=jnp.float32) * 0.01

    out = gpt2_embedding_phase(input_ids, wte, wpe)
    out = jax.block_until_ready(out)

    # Pure-JAX reference (same semantics as the PyTorch forward).
    ref = wte[input_ids] + wpe[jnp.arange(S)][None, :, :]
    assert out.shape == (B, S, H)
    assert jnp.allclose(out, ref, atol=1e-6), "mismatch vs reference"

    print("KERNEL_OK")
</pallas_src>

<mosaic_0001>
module attributes {stable_mosaic.version = 11 : i64} {
  func.func @kernel(%arg0: i32, %arg1: memref<16xi32, #tpu.memory_space<smem>>, %arg2: memref<8x128xf32, #tpu.memory_space<vmem>>, %arg3: memref<512x128xf32, #tpu.memory_space<any>>, %arg4: memref<8x128xf32, #tpu.memory_space<vmem>>, %arg5: memref<8x!tpu.dma_semaphore, #tpu.memory_space<semaphore_mem>>) attributes {dimension_semantics = [#tpu.dimension_semantics<parallel>], iteration_bounds = array<i64: 2>, scalar_prefetch = 1 : i64, scratch_operands = 1 : i64, tpu.core_type = #tpu.core_type<tc>, window_params = [{pipeline_mode = #tpu.pipeline_mode<synchronous>, transform_indices = @transform_0, window_bounds = array<i64: 8, 128>}, {}, {transform_indices = @transform_2, window_bounds = array<i64: 8, 128>}]} {
    %c8_i32 = arith.constant 8 : i32
    %0 = arith.muli %arg0, %c8_i32 : i32
    %c1_i32 = arith.constant 1 : i32
    %c0_i32 = arith.constant 0 : i32
    %1 = arith.cmpi eq, %c1_i32, %c0_i32 : i32
    %c1_i32_0 = arith.constant 1 : i32
    %2 = arith.select %1, %c1_i32_0, %c1_i32 : i32
    %3 = arith.remsi %arg0, %2 : i32
    %c0_i32_1 = arith.constant 0 : i32
    %4 = arith.cmpi ne, %3, %c0_i32_1 : i32
    %c0_i32_2 = arith.constant 0 : i32
    %5 = arith.cmpi slt, %3, %c0_i32_2 : i32
    %c0_i32_3 = arith.constant 0 : i32
    %6 = arith.cmpi slt, %2, %c0_i32_3 : i32
    %7 = arith.xori %5, %6 : i1
    %8 = arith.andi %7, %4 : i1
    %9 = arith.addi %3, %2 : i32
    %10 = arith.select %8, %9, %3 : i32
    %c8_i32_4 = arith.constant 8 : i32
    %11 = arith.muli %10, %c8_i32_4 : i32
    %12 = tpu.assume_multiple %11, 8 : i32
    %c0_i32_5 = arith.constant 0 : i32
    %c8_i32_6 = arith.constant 8 : i32
    %13 = arith.addi %c0_i32_5, %c8_i32_6 : i32
    %c1_i32_7 = arith.constant 1 : i32
    scf.for %arg6 = %c0_i32_5 to %13 step %c1_i32_7  : i32 {
      %c1_i32_17 = arith.constant 1 : i32
      %20 = arith.muli %arg6, %c1_i32_17 : i32
      %c0_i32_18 = arith.constant 0 : i32
      %21 = arith.addi %c0_i32_18, %20 : i32
      %22 = arith.addi %0, %21 : i32
      %23 = arith.index_cast %22 : i32 to index
      %24 = memref.load %arg1[%23] : memref<16xi32, #tpu.memory_space<smem>>
      %c8_i32_19 = arith.constant 8 : i32
      %c0_i32_20 = arith.constant 0 : i32
      %25 = arith.cmpi eq, %c8_i32_19, %c0_i32_20 : i32
      %c1_i32_21 = arith.constant 1 : i32
      %26 = arith.select %25, %c1_i32_21, %c8_i32_19 : i32
      %27 = arith.remsi %21, %26 : i32
      %c0_i32_22 = arith.constant 0 : i32
      %28 = arith.cmpi ne, %27, %c0_i32_22 : i32
      %c0_i32_23 = arith.constant 0 : i32
      %29 = arith.cmpi slt, %27, %c0_i32_23 : i32
      %c0_i32_24 = arith.constant 0 : i32
      %30 = arith.cmpi slt, %26, %c0_i32_24 : i32
      %31 = arith.xori %29, %30 : i1
      %32 = arith.andi %31, %28 : i1
      %33 = arith.addi %27, %26 : i32
      %34 = arith.select %32, %33, %27 : i32
      %c0_i32_25 = arith.constant 0 : i32
      %35 = tpu.memref_slice %arg3[%24, %c0_i32_25] : memref<512x128xf32, #tpu.memory_space<any>> -> memref<1x128xf32, #tpu.memory_space<any>>
      %c0_i32_26 = arith.constant 0 : i32
      %36 = tpu.memref_slice %arg4[%21, %c0_i32_26] : memref<8x128xf32, #tpu.memory_space<vmem>> -> memref<1x128xf32, #tpu.memory_space<vmem>>
      %37 = tpu.memref_slice %arg5[%34] : memref<8x!tpu.dma_semaphore, #tpu.memory_space<semaphore_mem>> -> memref<1x!tpu.dma_semaphore, #tpu.memory_space<semaphore_mem>>
      %38 = tpu.memref_squeeze %37 : memref<1x!tpu.dma_semaphore, #tpu.memory_space<semaphore_mem>> -> memref<!tpu.dma_semaphore, #tpu.memory_space<semaphore_mem>>
      tpu.enqueue_dma source(%35 : memref<1x128xf32, #tpu.memory_space<any>>) target(%36 : memref<1x128xf32, #tpu.memory_space<vmem>>) target_semaphore(%38 : memref<!tpu.dma_semaphore, #tpu.memory_space<semaphore_mem>>)
    }
    %c8_i32_8 = arith.constant 8 : i32
    %c0_i32_9 = arith.constant 0 : i32
    %c8_i32_10 = arith.constant 8 : i32
    %14 = arith.addi %c0_i32_9, %c8_i32_10 : i32
    %c1_i32_11 = arith.constant 1 : i32
    scf.for %arg6 = %c0_i32_9 to %14 step %c1_i32_11  : i32 {
      %c1_i32_17 = arith.constant 1 : i32
      %20 = arith.muli %arg6, %c1_i32_17 : i32
      %c0_i32_18 = arith.constant 0 : i32
      %21 = arith.addi %c0_i32_18, %20 : i32
      %c8_i32_19 = arith.constant 8 : i32
      %c0_i32_20 = arith.constant 0 : i32
      %22 = arith.cmpi eq, %c8_i32_19, %c0_i32_20 : i32
      %c1_i32_21 = arith.constant 1 : i32
      %23 = arith.select %22, %c1_i32_21, %c8_i32_19 : i32
      %24 = arith.remsi %21, %23 : i32
      %c0_i32_22 = arith.constant 0 : i32
      %25 = arith.cmpi ne, %24, %c0_i32_22 : i32
      %c0_i32_23 = arith.constant 0 : i32
      %26 = arith.cmpi slt, %24, %c0_i32_23 : i32
      %c0_i32_24 = arith.constant 0 : i32
      %27 = arith.cmpi slt, %23, %c0_i32_24 : i32
      %28 = arith.xori %26, %27 : i1
      %29 = arith.andi %28, %25 : i1
      %30 = arith.addi %24, %23 : i32
      %31 = arith.select %29, %30, %24 : i32
      %c0_i32_25 = arith.constant 0 : i32
      %c0_i32_26 = arith.constant 0 : i32
      %32 = tpu.memref_slice %arg3[%c0_i32_25, %c0_i32_26] : memref<512x128xf32, #tpu.memory_space<any>> -> memref<1x128xf32, #tpu.memory_space<any>>
      %c0_i32_27 = arith.constant 0 : i32
      %33 = tpu.memref_slice %arg4[%21, %c0_i32_27] : memref<8x128xf32, #tpu.memory_space<vmem>> -> memref<1x128xf32, #tpu.memory_space<vmem>>
      %34 = tpu.memref_slice %arg5[%31] : memref<8x!tpu.dma_semaphore, #tpu.memory_space<semaphore_mem>> -> memref<1x!tpu.dma_semaphore, #tpu.memory_space<semaphore_mem>>
      %35 = tpu.memref_squeeze %34 : memref<1x!tpu.dma_semaphore, #tpu.memory_space<semaphore_mem>> -> memref<!tpu.dma_semaphore, #tpu.memory_space<semaphore_mem>>
      tpu.wait_dma2 semaphore(%35 : memref<!tpu.dma_semaphore, #tpu.memory_space<semaphore_mem>>) src(%32 : memref<1x128xf32, #tpu.memory_space<any>>) dst(%33 : memref<1x128xf32, #tpu.memory_space<vmem>>)
    }
    %c8_i32_12 = arith.constant 8 : i32
    %15 = arith.index_cast %12 : i32 to index
    %c0 = arith.constant 0 : index
    %16 = vector.load %arg2[%15, %c0] : memref<8x128xf32, #tpu.memory_space<vmem>>, vector<8x128xf32>
    %c0_13 = arith.constant 0 : index
    %c0_14 = arith.constant 0 : index
    %17 = vector.load %arg4[%c0_13, %c0_14] : memref<8x128xf32, #tpu.memory_space<vmem>>, vector<8x128xf32>
    %18 = arith.addf %17, %16 : vector<8x128xf32>
    %c0_15 = arith.constant 0 : index
    %c0_16 = arith.constant 0 : index
    %19 = vector.load %arg4[%c0_15, %c0_16] : memref<8x128xf32, #tpu.memory_space<vmem>>, vector<8x128xf32>
    tpu.vector_store %arg4[%c0_15, %c0_16], %18 {strides = array<i32>} : memref<8x128xf32, #tpu.memory_space<vmem>>, vector<8x128xf32>,
    return
  }
  func.func @transform_0(%arg0: i32, %arg1: memref<16xi32, #tpu.memory_space<smem>>) -> (i32, i32) {
    %c0_i32 = arith.constant 0 : i32
    %c0_i32_0 = arith.constant 0 : i32
    %c0_i32_1 = arith.constant 0 : i32
    return %c0_i32, %c0_i32_0 : i32, i32
  }
  func.func @transform_2(%arg0: i32, %arg1: memref<16xi32, #tpu.memory_space<smem>>) -> (i32, i32) {
    %c0_i32 = arith.constant 0 : i32
    %c0_i32_0 = arith.constant 0 : i32
    return %arg0, %c0_i32 : i32, i32
  }
}

</mosaic_0001>

<bundles_post_ra>
// kernel: tpu_custom_call.1
= control target key start
LH: loop header
LB: loop body
LE: loop exit
PB: predicated region body
PF: predicated region fallthrough
CT: control target
= control target key end

     0   :  { %s573_s15 = smov [#allocation4]   ;;  %s722_s0 = inlined_call_operand.hbm [shape: s32[16], index: 0, kind: input, shape index: {}]   ;;  %s723_s1 = inlined_call_operand.hbm [shape: f32[8,128], index: 1, kind: input, shape index: {}]   ;;  %s724_s2 = inlined_call_operand.hbm [shape: f32[512,128], index: 2, kind: input, shape index: {}]   ;;  %s725_s3 = inlined_call_operand.hbm [shape: f32[16,128], index: 3, kind: output, shape index: {}]  }
   0x1   :  { %s9_s14 = sshll.u32 %s722_s0, 4  ;;  %s10_s14 = int_to_ptr.hbm [resolvable:$true] %s9_s14 }
   0x2   :  { %12 = dma.hbm_to_smem %s10_s14, 16, %s573_s15, [#allocation3] }
   0x3   :  { %537 = dma.done.wait [#allocation3], 16 }
   0x4   :  { %538 = vsyncadd [#allocation3], 4294967280 }
   0x5   :  { %15 = sfence }
   0x6   :  { %16 = vsyncpa [#allocation6], 0 }
   0x7   :  { %17 = vsyncpa [#allocation7], 0 }
   0x8   :  { %19 = vsyncpa [#allocation7 + $0x1], 0  ;;  %s599_s16 = smov 0   ;;  %s601_s17 = smov 0  }
   0x9   :  { %s603_s18 = smov 0   ;;  %s605_s19 = smov 0  }
   0xa LB: > { %s620_s0 = sadd.s32 4294967295, %s563_s19   ;;  %s327_s20 = sadd.s32 4294967294, %s563_s19   ;;  %s563_s19 = sphi %s605_s19, %s733_s19   ;;  %s559_s18 = sphi %s603_s18, %s732_s18   ;;  %s555_s17 = sphi %s601_s17, %s731_s17   ;;  %s551_s16 = sphi %s599_s16, %s730_s16  }
   0xb   : > { %s624_s21 = sadd.s32 1, %s563_s19   ;;  %s53_s22 = sadd.s32 1, %s559_s18 }
   0xc   : > { %s50_s23 = ssub.s32 %s563_s19, %s624_s21  ;;  %p63_p0 = scmp.ne.s32.totalorder %s559_s18, %s555_s17 }
   0xd   : > { %p51_p1 = scmp.eq.s32.totalorder %s50_s23, 0  ;;  %p64_p2 = scmp.eq.s32.totalorder %s620_s0, 1 }
   0xe   : > { %p69_p3 = scmp.ne.s32.totalorder %s555_s17, %s551_s16  ;;  %p70_p4 = scmp.eq.s32.totalorder %s327_s20, 1 }
   0xf   : > { %s635_s24 = scalar_select %p51_p1, %s559_s18, %s53_s22  }
  0x10   : > { %p637_p5 = por %p64_p2, %p63_p0  ;;  %p641_p6 = por %p70_p4, %p69_p3 }
  0x11   : > { %p328_p7 = scmp.ge.s32.totalorder %s563_s19, 1  ;;  %p77_p8 = scmp.lt.s32.totalorder %s563_s19, 3 }
  0x12   : > { %p366_p9 = scmp.eq.s32.totalorder %s620_s0, 0  ;;  %s89_s29 = sshll.u32 %s723_s1, 4  ;;  %s90_s29 = int_to_ptr.hbm [resolvable:$true] %s89_s29 }
  0x13   : > { %p78_p10 = pnand %p328_p7, %p77_p8  ;;  %s574_s30 = smov [#allocation5]  }
  0x14   : > { %s91_s4 = sshll.u32 %s574_s30, 4  ;;  %s92_s4 = int_to_ptr.vmem [resolvable:$true] %s91_s4 }
  0x15   : > { %p358_p11 = pneg %p78_p10  ;;  %104 = sbr.rel (%p78_p10) target bundleno = 93 (0x5d), region = 24 }
  0x17   : > { %p359_p12 = pnand %p366_p9, %p358_p11 }
  0x19   : > { %361 = dma.hbm_to_vmem [thread:$0]  (!%p359_p12), %s90_s29, 128, %s92_s4, [#allocation6]  }
  0x1a   : > { %540 = dma.done.wait (%p366_p9), [#allocation6], 128  }
  0x1b   : > { %542 = vsyncadd (%p366_p9), [#allocation6], 4294967168  ;;  %s726_s5 = sand.u32 1, %s555_s17   ;;  %s333_s6 = sshll.u32 %s620_s0, 3 }
  0x1c   : > { %s332_s7 = sshll.u32 %s726_s5, 3  ;;  %s657_s9 = smov 0  }
  0x1d   : > { %s655_s8 = scalar_lea.vmem [#allocation8], %s332_s7 }
  0x1e LB: >> { %s127_s10 = sadd.s32 %s567_s9, %s333_s6  ;;  %p129_p13 = scmp.lt.s32.totalorder %s567_s9, 0  ;;  %s567_s9 = sphi %s657_s9, %s126_s9  }
  0x1f   : >> { %s128_s11 = sld [smem:[#allocation4 + %s127_s10]]  ;;  %s130_s12 = ssub.s32 0, %s567_s9 }
  0x20   : >> { %s334_s13 = smin.u32 %s567_s9, %s130_s12  ;;  %s142_s14 = scalar_lea.vmem %s655_s8, %s567_s9 [#allocation8] }
  0x21   : >> { %s132_s15 = sand.u32 7, %s334_s13   ;;  %s670_s22 = sshll.u32 %s142_s14, 4  ;;  %s154_s22 = int_to_ptr.vmem [resolvable:$true] %s670_s22 }
  0x22   : >> { %s133_s20 = ssub.s32 0, %s132_s15  ;;  %s465_s14 = scalar_lea.hbm %s724_s2, 512 }
  0x23   : >> { %s735_s20 = smov (!%p129_p13, %s133_s20), %s132_s15 }
  0x24   : >> { %p336_p0 = scmp.lt.s32.totalorder %s735_s20, 0  ;;  %s139_s23 = sadd.s32 8, %s735_s20 }
  0x25   : >> { %s141_s29 = scalar_lea.hbm %s724_s2, %s128_s11 }
  0x26   : >> { %s737_s23 = smov (!%p336_p0, %s139_s23), %s735_s20  ;;  %s151_s30 = sshll.u32 %s141_s29, 4  ;;  %s152_s30 = int_to_ptr.hbm [resolvable:$true] %s151_s30 }
  0x27   : >> { %s143_s4 = scalar_lea.sflag [#allocation2], %s737_s23  ;;  %s461_s7 = sshra.s32 %s152_s30, 4  ;;  %s462_s7 = int_to_ptr.hbm [resolvable:$true] %s461_s7 }
  0x28   : >> { %s463_s10 = scalar_lea.hbm %s462_s7, 1  ;;  %p466_p2 = scmp.lt.s32.totalorder %s462_s7, %s724_s2 }
  0x29   : >> { %p464_p1 = scmp.ne.s32.totalorder %s462_s7, %s463_s10  ;;  %p467_p3 = scmp.lt.s32.totalorder %s465_s14, %s463_s10 }
  0x2b   : >> { %p468_p4 = por %p467_p3, %p466_p2 }
  0x2d   : >> { %p469_p7 = pnand %p468_p4, %p464_p1 }
  0x2f   : >> { %472 = shalt.err (!%p469_p7)  }
  0x30   : >> { %s473_s11 = sshra.s32 %s154_s22, 4  ;;  %s575_s23 = smov [#allocation8]   ;;  %s474_s11 = int_to_ptr.vmem [resolvable:$true] %s473_s11 }
  0x31   : >> { %s475_s20 = scalar_lea.vmem %s474_s11, 1  ;;  %s477_s27 = scalar_lea.vmem %s575_s23, 16 }
  0x32   : >> { %p476_p8 = scmp.ne.s32.totalorder %s474_s11, %s475_s20  ;;  %p478_p9 = scmp.lt.s32.totalorder %s474_s11, [#allocation8] }
  0x33   : >> { %p479_p10 = scmp.lt.s32.totalorder %s477_s27, %s475_s20 }
  0x35   : >> { %p480_p11 = por %p479_p10, %p478_p9 }
  0x37   : >> { %p481_p12 = pnand %p480_p11, %p476_p8 }
  0x39   : >> { %484 = shalt.err (!%p481_p12)  }
  0x3a   : >> { %156 = dma.hbm_to_vmem [thread:$0]  %s152_s30, 16, %s154_s22, %s143_s4 }
  0x3b   : >> { %s126_s9 = sadd.s32 1, %s567_s9  }
  0x3c   : >> { %p123_p13 = scmp.ge.s32.totalorder %s126_s9, 8  }
  0x3d   : > { %s569_s5 = smov (%p123_p13), 0  }
  0x3e   : > { %125 = sbr.rel (!%p123_p13) target bundleno = 30 (0x1e), region = 90 }
  0x43 LB: >> { %p163_p0 = scmp.lt.s32.totalorder %s571_s5, 0  ;;  %s164_s28 = ssub.s32 0, %s571_s5  ;;  %s571_s5 = sphi %s569_s5, %s162_s5  }
  0x44   : >> { %s337_s29 = smin.u32 %s571_s5, %s164_s28 }
  0x45   : >> { %s166_s7 = sand.u32 7, %s337_s29  }
  0x46   : >> { %s167_s10 = ssub.s32 0, %s166_s7 }
  0x47   : >> { %s739_s10 = smov (!%p163_p0, %s167_s10), %s166_s7 }
  0x48   : >> { %p339_p1 = scmp.lt.s32.totalorder %s739_s10, 0  ;;  %s173_s12 = sadd.s32 8, %s739_s10 }
  0x4a   : >> { %s741_s12 = smov (!%p339_p1, %s173_s12), %s739_s10 }
  0x4b   : >> { %s175_s22 = scalar_lea.sflag [#allocation2], %s741_s12 }
  0x4c   : >> { %543 = dma.done.wait %s175_s22, 16 }
  0x4d   : >> { %544 = vsyncadd %s175_s22, 4294967280  ;;  %s162_s5 = sadd.s32 1, %s571_s5  }
  0x4e   : >> { %p159_p2 = scmp.ge.s32.totalorder %s162_s5, 8  }
  0x4f   : > { %v179_v0 = vld [vmem:[#allocation5] sm:$0xff] (%p159_p2)  ;;  %v180_v1 = vld [vmem:[%s655_s8] sm:$0xff] (%p159_p2)  ;;  %s194_s4 = scalar_lea.hbm (%p159_p2), %s725_s3, %s333_s6  ;;  %s196_s13 = sshll.u32 (%p159_p2), %s655_s8, 4  ;;  %s197_s13 = int_to_ptr.vmem [resolvable:$true] %s196_s13 }
  0x50   : > { %161 = sbr.rel (!%p159_p2) target bundleno = 67 (0x43), region = 101  ;;  %v181_v2 = vadd.f32 (%p159_p2), %v180_v1, %v179_v0  ;;  %s198_s14 = sshll.u32 (%p159_p2), %s194_s4, 4  ;;  %s199_s14 = int_to_ptr.hbm [resolvable:$true] %s198_s14 }
  0x51   : > { %s729_s15 = sand.u32 (%p159_p2), 1, %s555_s17   ;;  %s499_s20 = sshra.s32 (%p159_p2), %s199_s14, 4  ;;  %s500_s20 = int_to_ptr.hbm [resolvable:$true] %s499_s20 }
  0x52   : > { %182 = vst [vmem:[%s655_s8] sm:$0xff] (%p159_p2), %v181_v2  ;;  %s184_s11 = scalar_lea.sflag (%p159_p2), [#allocation7], %s729_s15  ;;  %s501_s23 = scalar_lea.hbm (%p159_p2), %s500_s20, 8 }
  0x53   : > { %p502_p3 = scmp.ne.s32.totalorder (%p159_p2), %s500_s20, %s501_s23  ;;  %s505_s5 = scalar_lea.hbm (%p159_p2), %s725_s3, 16 }
  0x54   : > { %p506_p8 = scmp.lt.s32.totalorder (%p159_p2), %s500_s20, %s725_s3  ;;  %p507_p9 = scmp.lt.s32.totalorder (%p159_p2), %s505_s5, %s501_s23 }
  0x55   : > { %p503_p4 = pnand %p502_p3, %p637_p5 }
  0x56   : > { %p508_p10 = por %p507_p9, %p506_p8 }
  0x57   : > { %p504_p7 = pneg %p503_p4 }
  0x59   : > { %p509_p11 = pnand %p508_p10, %p504_p7 }
  0x5b   : > { %512 = shalt.err (!%p509_p11)
}
  0x5c   : > { %356 = dma.vmem_to_hbm [thread:$0]  (%p637_p5), %s197_s13, 128, %s199_s14, %s184_s11  }
  0x5d PF: > { %p368_p12 = scmp.ge.s32.totalorder %s563_s19, 2  ;;  %s210_s8 = sand.u32 1, %s551_s16  }
  0x5e   : > { %s211_s29 = scalar_lea.sflag [#allocation7], %s210_s8 }
  0x5f   : > { %p363_p13 = pnand %p368_p12, %p641_p6 }
  0x61   : > { %p364_p0 = pneg %p363_p13 }
  0x63   : > { %546 = dma.done.wait (%p364_p0), %s211_s29, 128  }
  0x64   : > { %548 = vsyncadd (%p364_p0), %s211_s29, 4294967168  ;;  %p22_p1 = scmp.ge.s32.totalorder %s624_s21, 4   ;;  %s730_s16 = smov %s555_s17 }
  0x65   : > { %s731_s17 = smov %s559_s18  ;;  %s732_s18 = smov %s635_s24 }
  0x66   : > { %s733_s19 = smov %s624_s21  ;;  %24 = sbr.rel (!%p22_p1) target bundleno = 10 (0xa), region = 112 }
  0x6b   :  { %217 = vsyncpa [#allocation6], 1 }
  0x6c   :  { %219 = vsyncpa [#allocation6 + $0x1], 1 }
  0x6d   :  { %220 = vsyncpa [#allocation7], 1 }
  0x6e   :  { %222 = vsyncpa [#allocation7 + $0x1], 1 }
  0x6f   :  { %223 = vsyncmov [#allocation2] }
  0x72   :  { %s224_s19 = vpop.sfrf %223 }
  0x73   :  { %p344_p5 = scmp.ne.s32.totalorder %s224_s19, 0 }
  0x75   :  { %228 = shalt.err (%p344_p5)  }
  0x76   :  { %230 = vsyncmov [#allocation2 + $0x1] }
  0x79   :  { %s231_s25 = vpop.sfrf %230 }
  0x7a   :  { %p345_p6 = scmp.ne.s32.totalorder %s231_s25, 0 }
  0x7c   :  { %235 = shalt.err (%p345_p6)  }
  0x7d   :  { %237 = vsyncmov [#allocation2 + $0x2] }
  0x80   :  { %s238_s26 = vpop.sfrf %237 }
  0x81   :  { %p346_p2 = scmp.ne.s32.totalorder %s238_s26, 0 }
  0x83   :  { %242 = shalt.err (%p346_p2)  }
  0x84   :  { %244 = vsyncmov [#allocation2 + $0x3] }
  0x87   :  { %s245_s24 = vpop.sfrf %244 }
  0x88   :  { %p347_p3 = scmp.ne.s32.totalorder %s245_s24, 0 }
  0x8a   :  { %249 = shalt.err (%p347_p3)  }
  0x8b   :  { %251 = vsyncmov [#allocation2 + $0x4] }
  0x8e   :  { %s252_s1 = vpop.sfrf %251 }
  0x8f   :  { %p348_p4 = scmp.ne.s32.totalorder %s252_s1, 0 }
  0x91   :  { %256 = shalt.err (%p348_p4)  }
  0x92   :  { %258 = vsyncmov [#allocation2 + $0x5] }
  0x95   :  { %s259_s2 = vpop.sfrf %258 }
  0x96   :  { %p349_p7 = scmp.ne.s32.totalorder %s259_s2, 0 }
  0x98   :  { %263 = shalt.err (%p349_p7)  }
  0x99   :  { %265 = vsyncmov [#allocation2 + $0x6] }
  0x9c   :  { %s266_s3 = vpop.sfrf %265 }
  0x9d   :  { %p350_p8 = scmp.ne.s32.totalorder %s266_s3, 0 }
  0x9f   :  { %270 = shalt.err (%p350_p8)  }
  0xa0   :  { %272 = vsyncmov [#allocation2 + $0x7] }
  0xa3   :  { %s273_s16 = vpop.sfrf %272 }
  0xa4   :  { %p351_p9 = scmp.ne.s32.totalorder %s273_s16, 0 }
  0xa6   :  { %277 = shalt.err (%p351_p9)  }

</bundles_post_ra>
